<compile_context>
chip_gen: v7x
topology: tpu7x:2x2x1
jax: 0.10.0
libtpu: 0.0.40
codegen_flags: <defaults>
</compile_context>

<pallas_src>
import math

import jax
import jax.numpy as jnp
from jax.experimental import pallas as pl
from jax.experimental.pallas import tpu as pltpu


# --------------------------------------------------------------------------- #
# Helpers
# --------------------------------------------------------------------------- #
def _round_up(v, m):
    return ((v + m - 1) // m) * m


def _nbytes(a):
    return a.size * jnp.dtype(a.dtype).itemsize


def _vmem_capacity_bytes():
    """Physical VMEM per TensorCore; conservative fallback if query unavailable."""
    try:
        cap = int(pltpu.get_tpu_info().vmem_capacity_bytes)
        if cap > 0:
            return cap
    except Exception:
        pass
    return 64 * 1024 * 1024  # v7x-sized conservative default


def _second_matmul(h_f32, w2_ref):
    """Second matmul: feed the MXU in the weight's storage dtype when floating,
    f32 accumulation via preferred_element_type."""
    if jnp.issubdtype(w2_ref.dtype, jnp.floating):
        return jnp.dot(h_f32.astype(w2_ref.dtype), w2_ref[...],
                       preferred_element_type=jnp.float32)
    # TODO(synk): quantized (int8/fp8) weights need explicit dequant scales.
    return jnp.dot(h_f32, w2_ref[...].astype(jnp.float32),
                   preferred_element_type=jnp.float32)


# --------------------------------------------------------------------------- #
# Kernels
# --------------------------------------------------------------------------- #
def _ffn_kernel_resident(x_ref, w1_ref, b1_ref, w2_ref, b2_ref, o_ref):
    # Full weights are VMEM-resident (constant block index); one row tile per step.
    h = jnp.dot(x_ref[...], w1_ref[...], preferred_element_type=jnp.float32)
    h = jnp.maximum(h + b1_ref[...].astype(jnp.float32), 0.0)  # ReLU; dropout(eval)=id
    out = _second_matmul(h, w2_ref) + b2_ref[...].astype(jnp.float32)
    o_ref[...] = out.astype(o_ref.dtype)


def _ffn_kernel_streamed(x_ref, w1_ref, b1_ref, w2_ref, b2_ref, o_ref, acc_ref):
    # d_ff streamed along grid axis 1; f32 accumulator resident across it.
    k = pl.program_id(1)

    @pl.when(k == 0)
    def _():
        # Fold b2 into the accumulator init (removes the epilogue add).
        acc_ref[...] = jnp.broadcast_to(b2_ref[...].astype(jnp.float32),
                                        acc_ref.shape)

    h = jnp.dot(x_ref[...], w1_ref[...], preferred_element_type=jnp.float32)
    h = jnp.maximum(h + b1_ref[...].astype(jnp.float32), 0.0)  # exact per-chunk ReLU
    acc_ref[...] += _second_matmul(h, w2_ref)

    @pl.when(k == pl.num_programs(1) - 1)
    def _():
        o_ref[...] = acc_ref[...].astype(o_ref.dtype)


# --------------------------------------------------------------------------- #
# Wrapper
# --------------------------------------------------------------------------- #
def feed_forward_block(x, w1, b1, w2, b2, *, compute_dtype=None, force_streamed=False):
    """x: (batch, seq, d_model) -> (batch, seq, d_model).

    w1: (d_model, d_ff), b1: (d_ff,), w2: (d_ff, d_model), b2: (d_model,).
    compute_dtype: optionally pre-cast x/w1/w2 (e.g. jnp.bfloat16) for full-rate MXU.
    """
    batch, seq, d_model = x.shape
    d_ff = w1.shape[1]
    M = batch * seq
    out_dtype = x.dtype

    if compute_dtype is not None:
        x = x.astype(compute_dtype)
        w1 = w1.astype(compute_dtype)
        w2 = w2.astype(compute_dtype)

    x2d = x.reshape(M, d_model)            # no host-side padding of activations
    b1_2d = b1.reshape(1, d_ff)
    b2_2d = b2.reshape(1, d_model)

    x_isz = jnp.dtype(x2d.dtype).itemsize
    w_isz = jnp.dtype(w1.dtype).itemsize
    o_isz = jnp.dtype(out_dtype).itemsize

    # ---- generation-aware VMEM budget --------------------------------------
    vmem_cap = _vmem_capacity_bytes()
    budget = int(vmem_cap * 0.6)           # headroom for Mosaic internal scratch
    tm_target = 512 if vmem_cap >= (96 << 20) else 384   # 128 MiB parts vs 64 MiB v7x

    rows8 = _round_up(M, 8)

    def resident_bytes(tm):
        return (2 * tm * d_model * x_isz                     # x tiles (double-buffered)
                + 2 * tm * d_model * o_isz                   # out tiles
                + 2 * (d_model * d_ff + d_ff) * w_isz        # w1 + b1
                + 2 * (d_ff * d_model + d_model) * w_isz     # w2 + b2
                + tm * d_ff * 4 + tm * d_model * 4)          # f32 intermediates

    def streamed_bytes(tm, tk):
        return (2 * tm * d_model * x_isz
                + 2 * tm * d_model * o_isz
                + 2 * (d_model * tk + tk) * w_isz            # w1/b1 chunk
                + 2 * (tk * d_model + d_model) * w_isz       # w2 chunk + b2
                + tm * d_model * 4                           # f32 accumulator scratch
                + tm * tk * 4 + tm * d_model * 4)            # f32 intermediates

    tm_candidates = sorted({min(t, rows8) for t in range(tm_target, 127, -128)},
                           reverse=True) or [rows8]
    d_ff_128 = _round_up(d_ff, 128)
    tk_candidates = [c for c in (512, 256, 128) if c <= d_ff_128] or [d_ff_128]

    use_resident, tm, tk = False, None, None
    if not force_streamed:
        for t in tm_candidates:            # largest row tile whose resident plan fits
            if resident_bytes(t) <= budget:
                use_resident, tm = True, t
                break
    if tm is None:
        for t in tm_candidates:            # streamed: largest tm, then largest tk
            for tkc in tk_candidates:
                if streamed_bytes(t, tkc) <= budget:
                    tm, tk = t, tkc
                    break
            if tm is not None:
                break
    if tm is None:                         # last resort: minimal tiles
        tm, tk = min(128, rows8), 128

    # Guarantee >=2 row blocks (dual-TensorCore sharding on v7x) whenever possible.
    if pl.cdiv(M, tm) < 2 and M > 8:
        tm = _round_up(-(-M // 2), 8)
    num_m = pl.cdiv(M, tm)

    # ---- build specs ---------------------------------------------------------
    if use_resident:
        grid = (num_m,)
        in_specs = [
            pl.BlockSpec((tm, d_model), lambda i: (i, 0)),       # x row tile
            pl.BlockSpec((d_model, d_ff), lambda i: (0, 0)),     # w1 (resident)
            pl.BlockSpec((1, d_ff), lambda i: (0, 0)),           # b1 (resident)
            pl.BlockSpec((d_ff, d_model), lambda i: (0, 0)),     # w2 (resident)
            pl.BlockSpec((1, d_model), lambda i: (0, 0)),        # b2 (resident)
        ]
        out_spec = pl.BlockSpec((tm, d_model), lambda i: (i, 0))
        scratch = []
        kernel = _ffn_kernel_resident
        dim_sem = ("parallel",)
        vmem_est = resident_bytes(tm)
        weight_reads = 1
        d_ff_used = d_ff
    else:
        # Zero-pad d_ff (weights only) to a tk multiple: exact math, no full-d_ff fallback.
        d_ff_pad = _round_up(d_ff, tk)
        if d_ff_pad != d_ff:
            w1 = jnp.pad(w1, ((0, 0), (0, d_ff_pad - d_ff)))
            b1_2d = jnp.pad(b1_2d, ((0, 0), (0, d_ff_pad - d_ff)))
            w2 = jnp.pad(w2, ((0, d_ff_pad - d_ff), (0, 0)))
        grid = (num_m, d_ff_pad // tk)
        in_specs = [
            pl.BlockSpec((tm, d_model), lambda i, k: (i, 0)),    # x row tile
            pl.BlockSpec((d_model, tk), lambda i, k: (0, k)),    # w1 chunk
            pl.BlockSpec((1, tk), lambda i, k: (0, k)),          # b1 chunk
            pl.BlockSpec((tk, d_model), lambda i, k: (k, 0)),    # w2 chunk
            pl.BlockSpec((1, d_model), lambda i, k: (0, 0)),     # b2 (grid-invariant)
        ]
        out_spec = pl.BlockSpec((tm, d_model), lambda i, k: (i, 0))
        scratch = [pltpu.VMEM((tm, d_model), jnp.float32)]
        kernel = _ffn_kernel_streamed
        dim_sem = ("parallel", "arbitrary")
        vmem_est = streamed_bytes(tm, tk)
        weight_reads = num_m
        d_ff_used = d_ff_pad

    # Generation-correct VMEM limit: never exceed physical capacity minus headroom.
    vmem_limit = int(min(vmem_cap - (8 << 20), max(32 << 20, 2 * vmem_est)))
    vmem_limit = max(vmem_limit, vmem_est + (2 << 20))

    w_bytes = _nbytes(w1) + _nbytes(b1_2d) + _nbytes(w2) + _nbytes(b2_2d)
    cost = pl.CostEstimate(
        flops=int(4 * M * d_model * d_ff_used),
        transcendentals=0,
        bytes_accessed=int(M * d_model * x_isz + weight_reads * w_bytes
                           + M * d_model * o_isz),
    )

    out2d = pl.pallas_call(
        kernel,
        out_shape=jax.ShapeDtypeStruct((M, d_model), out_dtype),
        grid_spec=pltpu.PrefetchScalarGridSpec(
            num_scalar_prefetch=0,
            grid=grid,
            in_specs=in_specs,
            out_specs=out_spec,
            scratch_shapes=scratch,
        ),
        compiler_params=pltpu.CompilerParams(
            dimension_semantics=dim_sem,
            vmem_limit_bytes=vmem_limit,
        ),
        cost_estimate=cost,
    )(x2d, w1, b1_2d, w2, b2_2d)

    return out2d.reshape(batch, seq, d_model)


# --------------------------------------------------------------------------- #
# Init (mimics nn.Linear defaults; weights stored pre-transposed)
# --------------------------------------------------------------------------- #
def init_params(key, d_model, d_ff, dtype=jnp.float32):
    k1, k2, k3, k4 = jax.random.split(key, 4)
    bound1 = 1.0 / math.sqrt(d_model)
    bound2 = 1.0 / math.sqrt(d_ff)
    w1 = jax.random.uniform(k1, (d_model, d_ff), dtype, -bound1, bound1)
    b1 = jax.random.uniform(k2, (d_ff,), dtype, -bound1, bound1)
    w2 = jax.random.uniform(k3, (d_ff, d_model), dtype, -bound2, bound2)
    b2 = jax.random.uniform(k4, (d_model,), dtype, -bound2, bound2)
    return w1, b1, w2, b2


if __name__ == "__main__":
    batch, seq, d_model, d_ff = 2, 8, 32, 64
    key = jax.random.PRNGKey(0)
    kx, kp = jax.random.split(key)

    x = jax.random.normal(kx, (batch, seq, d_model), dtype=jnp.float32)
    w1, b1, w2, b2 = init_params(kp, d_model, d_ff)

    ref = jnp.maximum(x @ w1 + b1, 0.0) @ w2 + b2

    # Resident-weight path (weights DMA'd once, stay in VMEM across row tiles).
    out_res = jax.block_until_ready(feed_forward_block(x, w1, b1, w2, b2))
    # Streamed-weight path (tiled d_ff with f32 accumulator) -- exercised explicitly.
    out_str = jax.block_until_ready(
        feed_forward_block(x, w1, b1, w2, b2, force_streamed=True))

    assert out_res.shape == (batch, seq, d_model)
    assert jnp.allclose(out_res, ref, atol=1e-3, rtol=1e-3), "resident path mismatch"
    assert jnp.allclose(out_str, ref, atol=1e-3, rtol=1e-3), "streamed path mismatch"

    # Ragged row count (partial last row tile handled in-kernel, no host-side padding).
    xb = jax.random.normal(jax.random.PRNGKey(1), (3, 5, d_model), dtype=jnp.float32)
    refb = jnp.maximum(xb @ w1 + b1, 0.0) @ w2 + b2
    outb = jax.block_until_ready(feed_forward_block(xb, w1, b1, w2, b2))
    assert jnp.allclose(outb, refb, atol=1e-3, rtol=1e-3), "ragged-rows mismatch"

    print("KERNEL_OK")
</pallas_src>

<mosaic_0001>
module attributes {stable_mosaic.version = 11 : i64} {
  func.func @_ffn_kernel_resident(%arg0: i32, %arg1: memref<8x32xf32, #tpu.memory_space<vmem>>, %arg2: memref<32x64xf32, #tpu.memory_space<vmem>>, %arg3: memref<1x64xf32, #tpu.memory_space<vmem>>, %arg4: memref<64x32xf32, #tpu.memory_space<vmem>>, %arg5: memref<1x32xf32, #tpu.memory_space<vmem>>, %arg6: memref<8x32xf32, #tpu.memory_space<vmem>>) attributes {dimension_semantics = [#tpu.dimension_semantics<parallel>], iteration_bounds = array<i64: 2>, scalar_prefetch = 0 : i64, scratch_operands = 0 : i64, tpu.core_type = #tpu.core_type<tc>, window_params = [{transform_indices = @transform_0, window_bounds = array<i64: 8, 32>}, {pipeline_mode = #tpu.pipeline_mode<synchronous>, transform_indices = @transform_1, window_bounds = array<i64: 32, 64>}, {pipeline_mode = #tpu.pipeline_mode<synchronous>, transform_indices = @transform_2, window_bounds = array<i64: 1, 64>}, {pipeline_mode = #tpu.pipeline_mode<synchronous>, transform_indices = @transform_3, window_bounds = array<i64: 64, 32>}, {pipeline_mode = #tpu.pipeline_mode<synchronous>, transform_indices = @transform_4, window_bounds = array<i64: 1, 32>}, {transform_indices = @transform_5, window_bounds = array<i64: 8, 32>}]} {
    %c0 = arith.constant 0 : index
    %c0_0 = arith.constant 0 : index
    %0 = vector.load %arg1[%c0, %c0_0] : memref<8x32xf32, #tpu.memory_space<vmem>>, vector<8x32xf32>
    %c0_1 = arith.constant 0 : index
    %c0_2 = arith.constant 0 : index
    %1 = vector.load %arg2[%c0_1, %c0_2] : memref<32x64xf32, #tpu.memory_space<vmem>>, vector<32x64xf32>
    %cst = arith.constant dense<0.000000e+00> : vector<8x64xf32>
    %2 = tpu.matmul %0, %1, %cst {dimension_numbers = #tpu.dot_dimension_numbers<[1], [0], [0], [1], [0, 0, 1, 1], [], []>} : vector<8x32xf32>, vector<32x64xf32>, vector<8x64xf32> -> vector<8x64xf32>
    %c0_3 = arith.constant 0 : index
    %c0_4 = arith.constant 0 : index
    %3 = vector.load %arg3[%c0_3, %c0_4] : memref<1x64xf32, #tpu.memory_space<vmem>>, vector<1x64xf32>
    %4 = vector.broadcast %3 : vector<1x64xf32> to vector<8x64xf32>
    %5 = arith.addf %2, %4 : vector<8x64xf32>
    %cst_5 = arith.constant 0.000000e+00 : f32
    %6 = vector.broadcast %cst_5 : f32 to vector<8x64xf32>
    %7 = arith.maximumf %5, %6 : vector<8x64xf32>
    %c0_6 = arith.constant 0 : index
    %c0_7 = arith.constant 0 : index
    %8 = vector.load %arg4[%c0_6, %c0_7] : memref<64x32xf32, #tpu.memory_space<vmem>>, vector<64x32xf32>
    %cst_8 = arith.constant dense<0.000000e+00> : vector<8x32xf32>
    %9 = tpu.matmul %7, %8, %cst_8 {dimension_numbers = #tpu.dot_dimension_numbers<[1], [0], [0], [1], [0, 0, 1, 1], [], []>} : vector<8x64xf32>, vector<64x32xf32>, vector<8x32xf32> -> vector<8x32xf32>
    %c0_9 = arith.constant 0 : index
    %c0_10 = arith.constant 0 : index
    %10 = vector.load %arg5[%c0_9, %c0_10] : memref<1x32xf32, #tpu.memory_space<vmem>>, vector<1x32xf32>
    %11 = vector.broadcast %10 : vector<1x32xf32> to vector<8x32xf32>
    %12 = arith.addf %9, %11 : vector<8x32xf32>
    %c0_11 = arith.constant 0 : index
    %c0_12 = arith.constant 0 : index
    %13 = vector.load %arg6[%c0_11, %c0_12] : memref<8x32xf32, #tpu.memory_space<vmem>>, vector<8x32xf32>
    tpu.vector_store %arg6[%c0_11, %c0_12], %12 {strides = array<i32>} : memref<8x32xf32, #tpu.memory_space<vmem>>, vector<8x32xf32>,
    return
  }
  func.func @transform_0(%arg0: i32) -> (i32, i32) {
    %c0_i32 = arith.constant 0 : i32
    %c0_i32_0 = arith.constant 0 : i32
    return %arg0, %c0_i32 : i32, i32
  }
  func.func @transform_1(%arg0: i32) -> (i32, i32) {
    %c0_i32 = arith.constant 0 : i32
    %c0_i32_0 = arith.constant 0 : i32
    %c0_i32_1 = arith.constant 0 : i32
    return %c0_i32, %c0_i32_0 : i32, i32
  }
  func.func @transform_2(%arg0: i32) -> (i32, i32) {
    %c0_i32 = arith.constant 0 : i32
    %c0_i32_0 = arith.constant 0 : i32
    %c0_i32_1 = arith.constant 0 : i32
    return %c0_i32, %c0_i32_0 : i32, i32
  }
  func.func @transform_3(%arg0: i32) -> (i32, i32) {
    %c0_i32 = arith.constant 0 : i32
    %c0_i32_0 = arith.constant 0 : i32
    %c0_i32_1 = arith.constant 0 : i32
    return %c0_i32, %c0_i32_0 : i32, i32
  }
  func.func @transform_4(%arg0: i32) -> (i32, i32) {
    %c0_i32 = arith.constant 0 : i32
    %c0_i32_0 = arith.constant 0 : i32
    %c0_i32_1 = arith.constant 0 : i32
    return %c0_i32, %c0_i32_0 : i32, i32
  }
  func.func @transform_5(%arg0: i32) -> (i32, i32) {
    %c0_i32 = arith.constant 0 : i32
    %c0_i32_0 = arith.constant 0 : i32
    return %arg0, %c0_i32 : i32, i32
  }
}

</mosaic_0001>

<bundles_post_ra>
// kernel: tpu_custom_call.1
= control target key start
LH: loop header
LB: loop body
LE: loop exit
PB: predicated region body
PF: predicated region fallthrough
CT: control target
= control target key end

     0   :  { %10 = vsyncpa [#allocation3], 0  ;;  %s830_s0 = inlined_call_operand.vmem [shape: f32[16,32], index: 0, kind: input, shape index: {}]   ;;  %s831_s1 = inlined_call_operand.vmem [shape: f32[32,64], index: 1, kind: input, shape index: {}]   ;;  %s832_s2 = inlined_call_operand.vmem [shape: f32[1,64], index: 2, kind: input, shape index: {}]   ;;  %s833_s3 = inlined_call_operand.vmem [shape: f32[64,32], index: 3, kind: input, shape index: {}]   ;;  %s834_s4 = inlined_call_operand.vmem [shape: f32[1,32], index: 4, kind: input, shape index: {}]   ;;  %s835_s5 = inlined_call_operand.hbm [shape: f32[16,32], index: 5, kind: output, shape index: {}]  }
   0x1   :  { %12 = vsyncpa [#allocation3 + $0x1], 0  ;;  %s686_s18 = smov 0   ;;  %s688_s19 = smov 0  }
   0x2   :  { %s690_s20 = smov 0   ;;  %s692_s21 = smov 0  }
   0x3 LB: > { %s707_s22 = sadd.s32 4294967295, %s650_s21   ;;  %s470_s23 = sadd.s32 4294967294, %s650_s21   ;;  %s650_s21 = sphi %s692_s21, %s841_s21   ;;  %s646_s20 = sphi %s690_s20, %s840_s20   ;;  %s642_s19 = sphi %s688_s19, %s839_s19   ;;  %s638_s18 = sphi %s686_s18, %s838_s18  }
   0x4   : > { %s711_s24 = sadd.s32 1, %s650_s21   ;;  %s135_s25 = sadd.s32 1, %s646_s20 }
   0x5   : > { %s132_s26 = ssub.s32 %s650_s21, %s711_s24  ;;  %p145_p0 = scmp.ne.s32.totalorder %s646_s20, %s642_s19 }
   0x6   : > { %p133_p1 = scmp.eq.s32.totalorder %s132_s26, 0  ;;  %p146_p2 = scmp.eq.s32.totalorder %s707_s22, 1 }
   0x7   : > { %p151_p3 = scmp.ne.s32.totalorder %s642_s19, %s638_s18  ;;  %p152_p4 = scmp.eq.s32.totalorder %s470_s23, 1 }
   0x8   : > { %s722_s27 = scalar_select %p133_p1, %s646_s20, %s135_s25  }
   0x9   : > { %p724_p5 = por %p146_p2, %p145_p0  ;;  %p728_p6 = por %p152_p4, %p151_p3 }
   0xa   : > { %p473_p7 = scmp.ge.s32.totalorder %s650_s21, 1  ;;  %p189_p8 = scmp.lt.s32.totalorder %s650_s21, 3 }
   0xc   : > { %p190_p9 = pnand %p473_p7, %p189_p8 }
   0xd   : > { %v221_v0 = vld [vmem:[%s831_s1] sm:$0xff] (!%p190_p9)  ;;  %v222_v1 = vld [vmem:[%s831_s1 + $0x8] sm:$0xff] (!%p190_p9)  ;;  %v223_v2 = vld [vmem:[%s831_s1 + $0x10] sm:$0xff] (!%p190_p9)  ;;  %v652_v3 = vmov (!%p190_p9), 0.0|0.0   ;;  %vm653_vm0 = vmmov (!%p190_p9), 0   ;;  %v654_v6 = vmov (!%p190_p9), 0.0  }
   0xe   : > { %193 = sbr.rel (%p190_p9) target bundleno = 470 (0x1d6), region = 40  ;;  %528 = vmatprep.subr.bf16.mxu0 (!%p190_p9), %v652_v3  ;;  %v529_v4 = vpack.c.bf16 (!%p190_p9), %v222_v1, %v221_v0  ;;  %v224_v5 = vld [vmem:[%s831_s1 + $0x18] sm:$0xff] (!%p190_p9)  ;;  %506 = vmatprep.mubr.msk.f32.mxu0 (!%p190_p9), %vm653_vm0, %v654_v6  ;;  %p216_p10 = scmp.lt.s32.totalorder (!%p190_p9), %s707_s22, 1  ;;  %v307_v7 = vld [vmem:[%s833_s3] sm:$0xff] (!%p190_p9)  ;;  %v308_v8 = vld [vmem:[%s833_s3 + $0x8] sm:$0xff] (!%p190_p9)  ;;  %vm232_vm1 = vcmask (!%p190_p9), 261120  }
   0xf   : > { %534 = vmatprep.subr.bf16.mxu1 (!%p190_p9), %v652_v3  ;;  %v535_v9 = vpack.c.bf16 (!%p190_p9), %v308_v8, %v307_v7  ;;  %v309_v10 = vld [vmem:[%s833_s3 + $0x10] sm:$0xff] (!%p190_p9)  ;;  %v310_v11 = vld [vmem:[%s833_s3 + $0x18] sm:$0xff] (!%p190_p9)  ;;  %525 = vmatprep.mubr.msk.f32.mxu1 (!%p190_p9), %vm653_vm0, %v654_v6  ;;  %v532_v12 = vpack.c.bf16 (!%p190_p9), %v224_v5, %v223_v2  ;;  %v311_v14 = vld [vmem:[%s833_s3 + $0x20] sm:$0xff] (!%p190_p9)  ;;  %vm322_vm2 = vcmask (!%p190_p9), 523264   ;;  %s213_s26 = sand.u32 (!%p190_p9), 1, %s642_s19   ;;  %s481_s8 = sshll.u32 (!%p190_p9), %s707_s22, 7 }
  0x10   : > { %530 = vmatpush3.bf16.msra.mxu0 (!%p190_p9), %v529_v4  ;;  %v538_v13 = vpack.c.bf16 (!%p190_p9), %v310_v11, %v309_v10  ;;  %v312_v15 = vld [vmem:[%s833_s3 + $0x28] sm:$0xff] (!%p190_p9)  ;;  %v313_v18 = vld [vmem:[%s833_s3 + $0x30] sm:$0xff] (!%p190_p9)  ;;  %v314_v19 = vld [vmem:[%s833_s3 + $0x38] sm:$0xff] (!%p190_p9)  ;;  %s398_s14 = scalar_lea.sflag (!%p190_p9), [#allocation3], %s213_s26 }
  0x11   : > { %531 = vmatprep.subr.bf16.mxu0 (!%p190_p9), %v652_v3  ;;  %536 = vmatpush3.bf16.msra.mxu1 (!%p190_p9), %v535_v9  ;;  %v541_v17 = vpack.c.bf16 (!%p190_p9), %v312_v15, %v311_v14  ;;  %v544_v20 = vpack.c.bf16 (!%p190_p9), %v314_v19, %v313_v18  ;;  %v476_v21 = vld [vmem:[%s832_s2] ss:$0 sm:$0xff] (!%p190_p9) }
  0x12   : > { %537 = vmatprep.subr.bf16.mxu1 (!%p190_p9), %v652_v3  ;;  %v478_v26 = vld [vmem:[%s834_s4] ss:$0 sm:$0xff] (!%p190_p9) }
  0x14   : > { %533 = vmatpush3.bf16.msra.mxu0 (!%p190_p9), %v532_v12 }
  0x15   : > { %s217_s30 = scalar_select %p216_p10, %s707_s22, 1  ;;  %539 = vmatpush3.bf16.msra.mxu1 %v538_v13 }
  0x16   : > { %540 = vmatprep.subr.bf16.mxu1 %v652_v3  ;;  %s655_s22 = smov [#allocation2]  }
  0x17   : > { %s475_s6 = sshll.u32 %s217_s30, 3  ;;  %s474_s30 = sshll.u32 %s213_s26, 3 }
  0x18   : > { %s219_s13 = scalar_lea.vmem %s830_s0, %s475_s6  ;;  %s215_s9 = scalar_lea.vmem [#allocation2], %s474_s30 }
  0x19   : > { %v220_v16 = vld [vmem:[%s219_s13] sm:$0xff]  ;;  %542 = vmatpush3.bf16.msra.mxu1 %v541_v17  ;;  %s411_s10 = sshll.u32 %s215_s9, 4  ;;  %s787_s13 = scalar_lea.hbm %s835_s5, %s481_s8  ;;  %s789_s10 = int_to_ptr.vmem [resolvable:$true] %s411_s10 }
  0x1a   : > { %507 = vmatmul.mubr.msk.f32.vlgmr.msra.gmra.mrb[0].mxu0 %vm232_vm1, %v220_v16  ;;  %543 = vmatprep.subr.bf16.mxu1 %v652_v3  ;;  %s588_s15 = scalar_lea.vmem %s789_s10, 128  ;;  %s592_s16 = sshll.u32 %s655_s22, 4  ;;  %s593_s16 = int_to_ptr.vmem [resolvable:$false] %s592_s16 }
  0x1b   : > { %p589_p11 = scmp.ne.s32.totalorder %s789_s10, %s588_s15  ;;  %s594_s17 = scalar_lea.vmem %s593_s16, 256 }
  0x1c   : > { %p595_p0 = scmp.lt.s32.totalorder %s789_s10, %s593_s16  ;;  %p596_p1 = scmp.lt.s32.totalorder %s594_s17, %s588_s15 }
  0x1d   : > { %545 = vmatpush3.bf16.msra.mxu1 %v544_v20  ;;  %p590_p12 = pnand %p589_p11, %p724_p5 }
  0x1e   : > { %p597_p2 = por %p596_p1, %p595_p0 }
  0x1f   : > { %p591_p13 = pneg %p590_p12 }
  0x21   : > { %p598_p3 = pnand %p597_p2, %p591_p13 }
  0xed   : > { %v302_v22 = vpop.f32.mrb[0].mxu0 }
  0xee   : > { %v303_v23 = vadd.f32 %v476_v21, %v302_v22  ;;  %v508_v24 = vpop.f32.mrb[1].mxu0 }
  0xf0   : > { %v306_v25 = vmax.f32 %v303_v23, 0.0 }
  0xf2   : > { %526 = vmatmul.mubr.msk.f32.vlgmr.msra.gmra.mrb[0].mxu1 %vm322_vm2, %v306_v25 }
 0x1c5   : > { %v392_v27 = vpop.f32.mrb[0].mxu1 }
 0x1c6   : > { %v393_v28 = vadd.f32 %v478_v26, %v392_v27  ;;  %v527_v29 = vpop.f32.mrb[1].mxu1 }
 0x1c8   : > { %396 = vst.msk [vmem:[%s215_s9] sm:$0xff] %vm232_vm1, %v393_v28 }
 0x1c9   : > { %601 = shalt.err (!%p598_p3)
}
 0x1ca   : > { %s602_s23 = scalar_lea.hbm %s787_s13, 128  ;;  %s606_s30 = scalar_lea.hbm %s835_s5, 256 }
 0x1cb   : > { %p603_p4 = scmp.ne.s32.totalorder %s787_s13, %s602_s23  ;;  %p607_p9 = scmp.lt.u32.totalorder %s787_s13, %s835_s5 }
 0x1cc   : > { %p608_p10 = scmp.lt.u32.totalorder %s606_s30, %s602_s23  ;;  %p610_p12 = scmp.lt.u32.totalorder %s602_s23, %s787_s13 }
 0x1cd   : > { %p604_p7 = pnand %p603_p4, %p724_p5 }
 0x1ce   : > { %p609_p11 = por %p608_p10, %p607_p9 }
 0x1cf   : > { %p605_p8 = pneg %p604_p7 }
 0x1d0   : > { %p611_p13 = por %p610_p12, %p609_p11 }
 0x1d2   : > { %p612_p0 = pnand %p611_p13, %p605_p8 }
 0x1d4   : > { %615 = shalt.err (!%p612_p0)
}
 0x1d5   : > { %546 = dma.vmem_to_hbm [thread:$0]  (%p724_p5), %s789_s10, 128, %s787_s13, %s398_s14  }
 0x1d6 PF: > { %p552_p1 = scmp.ge.s32.totalorder %s650_s21, 2  ;;  %s423_s8 = sand.u32 1, %s638_s18  }
 0x1d7   : > { %s424_s9 = scalar_lea.sflag [#allocation3], %s423_s8 }
 0x1d8   : > { %p549_p2 = pnand %p552_p1, %p728_p6 }
 0x1da   : > { %633 = dma.done.wait (!%p549_p2), %s424_s9, 128  }
 0x1db   : > { %635 = vsyncadd (!%p549_p2), %s424_s9, 4294967168  ;;  %p15_p3 = scmp.ge.s32.totalorder %s711_s24, 4   ;;  %s838_s18 = smov %s642_s19 }
 0x1dc   : > { %s839_s19 = smov %s646_s20  ;;  %s840_s20 = smov %s722_s27 }
 0x1dd   : > { %s841_s21 = smov %s711_s24  ;;  %17 = sbr.rel (!%p15_p3) target bundleno = 3 (0x3), region = 75 }
 0x1e4   :  { %429 = vsyncpa [#allocation3], 1 }
 0x1e5   :  { %431 = vsyncpa [#allocation3 + $0x1], 1 }

</bundles_post_ra>
